<compile_context>
chip_gen: v7x
topology: tpu7x:2x2x1
jax: 0.10.0
libtpu: 0.0.40
codegen_flags: <defaults>
</compile_context>

<pallas_src>
import functools

import jax
import jax.numpy as jnp
from jax.experimental import pallas as pl
from jax.experimental.pallas import tpu as pltpu


def _conv_gemm_kernel(w_ref, p_ref, b_ref, o_ref):
    """out[OC, tm] = Wflat[OC, K] @ Pt[K, tm] + b[OC, 1]   (single fused GEMM).

    w_ref: (OC, K)   resident flattened weights, K = C*KH*KW
    p_ref: (K, tm)   M-tile of im2col patches, M on the lane axis
    b_ref: (OC, 1)   resident bias (broadcast across lanes)
    o_ref: (OC, tm)  lane-dense output tile
    """
    o_ref[...] = (
        jnp.dot(w_ref[...], p_ref[...], preferred_element_type=jnp.float32)
        + b_ref[...]
    ).astype(o_ref.dtype)


def _pick_m_tile(M, cap=2048):
    """Lane-dense tile along M: multiple of 128 that divides M.

    Grows the tile while it divides M, stays under `cap`, and leaves at least
    two grid steps (so both v7x TensorCores get work and DMA/compute overlap).
    Falls back to a single full-array block if M is not a multiple of 128.
    """
    if M % 128 != 0:
        return M
    tm = 128
    while tm * 2 <= cap and M % (tm * 2) == 0 and M // (tm * 2) >= 2:
        tm *= 2
    return tm


def conv2d_prior_forward(x, W, b=None, *, stride=1, padding=0, dilation=1):
    """Equivalent of F.conv2d(x, W, b, stride, padding, dilation), NCHW."""
    N, C, H, Wd = x.shape
    OC, C2, KH, KW = W.shape
    assert C == C2

    OH = (H + 2 * padding - dilation * (KH - 1) - 1) // stride + 1
    OW = (Wd + 2 * padding - dilation * (KW - 1) - 1) // stride + 1
    M = N * OH * OW
    K = C * KH * KW

    # --- glue: padding + im2col tap extraction, K on sublanes / M on lanes ---
    # TODO(synk): for large H/W/C skip this KH*KW-replicated im2col (9x HBM
    # traffic) and instead pass x_pad with memory_space=pl.ANY plus per-tap
    # index_map offsets / manual make_async_copy gathers inside the kernel.
    x_pad = jnp.pad(x, ((0, 0), (0, 0), (padding, padding), (padding, padding)))
    taps = []
    for kh in range(KH):
        for kw in range(KW):
            h0 = kh * dilation
            w0 = kw * dilation
            sl = x_pad[
                :,
                :,
                h0 : h0 + (OH - 1) * stride + 1 : stride,
                w0 : w0 + (OW - 1) * stride + 1 : stride,
            ]  # (N, C, OH, OW)
            taps.append(jnp.transpose(sl, (1, 0, 2, 3)).reshape(C, M))  # (C, M)
    Pt = jnp.concatenate(taps, axis=0).astype(jnp.float32)  # (K, M)

    # Weight K axis ordered to match the tap stacking: (kh, kw, c).
    Wflat = jnp.transpose(W, (0, 2, 3, 1)).reshape(OC, K).astype(jnp.float32)
    if b is None:
        b = jnp.zeros((OC,), jnp.float32)
    b2 = b.reshape(OC, 1).astype(jnp.float32)

    tm = _pick_m_tile(M)
    grid = (M // tm,)

    out2d = pl.pallas_call(
        _conv_gemm_kernel,
        out_shape=jax.ShapeDtypeStruct((OC, M), jnp.float32),
        grid=grid,
        in_specs=[
            pl.BlockSpec((OC, K), lambda i: (0, 0)),   # resident weights
            pl.BlockSpec((K, tm), lambda i: (0, i)),   # M-tile of patches
            pl.BlockSpec((OC, 1), lambda i: (0, 0)),   # resident bias
        ],
        out_specs=pl.BlockSpec((OC, tm), lambda i: (0, i)),
        compiler_params=pltpu.CompilerParams(
            dimension_semantics=("parallel",),
        ),
    )(Wflat, Pt, b2)

    # (OC, M) -> (OC, N, OH, OW) -> NCHW (N, OC, OH, OW)
    return jnp.transpose(out2d.reshape(OC, N, OH, OW), (1, 0, 2, 3))


if __name__ == "__main__":
    # Module config: Conv2dPrior(in_channels=4, out_channels=8, kernel_size=3,
    #                            stride=1, padding=1, dilation=1, bias=True)
    in_channels, out_channels, kernel_size = 4, 8, 3
    stride, padding, dilation = 1, 1, 1

    key = jax.random.PRNGKey(0)
    kx, kw, kb = jax.random.split(key, 3)

    # Deterministic "prior samples" standing in for W_prior.sample / b_prior.sample.
    W = 0.1 * jax.random.normal(
        kw, (out_channels, in_channels, kernel_size, kernel_size), jnp.float32
    )
    b = 0.1 * jax.random.normal(kb, (out_channels,), jnp.float32)

    x = jax.random.normal(kx, (2, 4, 16, 16), jnp.float32)

    fwd = jax.jit(
        functools.partial(
            conv2d_prior_forward, stride=stride, padding=padding, dilation=dilation
        )
    )
    out = fwd(x, W, b)
    out = jax.block_until_ready(out)

    # Self-check against XLA's conv (same semantics as F.conv2d, NCHW/OIHW).
    ref = jax.lax.conv_general_dilated(
        x,
        W,
        window_strides=(stride, stride),
        padding=[(padding, padding), (padding, padding)],
        rhs_dilation=(dilation, dilation),
        dimension_numbers=("NCHW", "OIHW", "NCHW"),
    ) + b[None, :, None, None]
    assert out.shape == ref.shape
    assert jnp.max(jnp.abs(out - ref)) < 1e-4

    print("KERNEL_OK")
</pallas_src>

<mosaic_0001>
module attributes {stable_mosaic.version = 11 : i64} {
  func.func @_conv_gemm_kernel(%arg0: i32, %arg1: memref<8x36xf32, #tpu.memory_space<vmem>>, %arg2: memref<36x256xf32, #tpu.memory_space<vmem>>, %arg3: memref<8x1xf32, #tpu.memory_space<vmem>>, %arg4: memref<8x256xf32, #tpu.memory_space<vmem>>) attributes {dimension_semantics = [#tpu.dimension_semantics<parallel>], iteration_bounds = array<i64: 2>, scalar_prefetch = 0 : i64, scratch_operands = 0 : i64, tpu.core_type = #tpu.core_type<tc>, window_params = [{pipeline_mode = #tpu.pipeline_mode<synchronous>, transform_indices = @transform_0, window_bounds = array<i64: 8, 36>}, {transform_indices = @transform_1, window_bounds = array<i64: 36, 256>}, {pipeline_mode = #tpu.pipeline_mode<synchronous>, transform_indices = @transform_2, window_bounds = array<i64: 8, 1>}, {transform_indices = @transform_3, window_bounds = array<i64: 8, 256>}]} {
    %c0 = arith.constant 0 : index
    %c0_0 = arith.constant 0 : index
    %0 = vector.load %arg1[%c0, %c0_0] : memref<8x36xf32, #tpu.memory_space<vmem>>, vector<8x36xf32>
    %c0_1 = arith.constant 0 : index
    %c0_2 = arith.constant 0 : index
    %1 = vector.load %arg2[%c0_1, %c0_2] : memref<36x256xf32, #tpu.memory_space<vmem>>, vector<36x256xf32>
    %cst = arith.constant dense<0.000000e+00> : vector<8x256xf32>
    %2 = tpu.matmul %0, %1, %cst {dimension_numbers = #tpu.dot_dimension_numbers<[1], [0], [0], [1], [0, 0, 1, 1], [], []>} : vector<8x36xf32>, vector<36x256xf32>, vector<8x256xf32> -> vector<8x256xf32>
    %c0_3 = arith.constant 0 : index
    %c0_4 = arith.constant 0 : index
    %3 = vector.load %arg3[%c0_3, %c0_4] : memref<8x1xf32, #tpu.memory_space<vmem>>, vector<8x1xf32>
    %4 = vector.broadcast %3 : vector<8x1xf32> to vector<8x256xf32>
    %5 = arith.addf %2, %4 : vector<8x256xf32>
    %c0_5 = arith.constant 0 : index
    %c0_6 = arith.constant 0 : index
    %6 = vector.load %arg4[%c0_5, %c0_6] : memref<8x256xf32, #tpu.memory_space<vmem>>, vector<8x256xf32>
    tpu.vector_store %arg4[%c0_5, %c0_6], %5 {strides = array<i32>} : memref<8x256xf32, #tpu.memory_space<vmem>>, vector<8x256xf32>,
    return
  }
  func.func @transform_0(%arg0: i32) -> (i32, i32) {
    %c0_i32 = arith.constant 0 : i32
    %c0_i32_0 = arith.constant 0 : i32
    %c0_i32_1 = arith.constant 0 : i32
    return %c0_i32, %c0_i32_0 : i32, i32
  }
  func.func @transform_1(%arg0: i32) -> (i32, i32) {
    %c0_i32 = arith.constant 0 : i32
    %c0_i32_0 = arith.constant 0 : i32
    return %c0_i32, %arg0 : i32, i32
  }
  func.func @transform_2(%arg0: i32) -> (i32, i32) {
    %c0_i32 = arith.constant 0 : i32
    %c0_i32_0 = arith.constant 0 : i32
    %c0_i32_1 = arith.constant 0 : i32
    return %c0_i32, %c0_i32_0 : i32, i32
  }
  func.func @transform_3(%arg0: i32) -> (i32, i32) {
    %c0_i32 = arith.constant 0 : i32
    %c0_i32_0 = arith.constant 0 : i32
    return %c0_i32, %arg0 : i32, i32
  }
}

</mosaic_0001>

<bundles_post_ra>
// kernel: conv2d_prior_forward.1
= control target key start
LH: loop header
LB: loop body
LE: loop exit
PB: predicated region body
PF: predicated region fallthrough
CT: control target
= control target key end

     0   :  { %s472_s12 = smov 0   ;;  %s474_s13 = smov 0   ;;  %s530_s0 = inlined_call_operand.vmem [shape: f32[8,36], index: 0, kind: input, shape index: {}]   ;;  %s531_s1 = inlined_call_operand.vmem [shape: f32[36,512], index: 1, kind: input, shape index: {}]   ;;  %s532_s2 = inlined_call_operand.vmem [shape: f32[8,1], index: 2, kind: input, shape index: {}]   ;;  %s533_s3 = inlined_call_operand.vmem [shape: f32[8,512], index: 3, kind: output, shape index: {}]  }
   0x1   :  { %s476_s14 = smov 0  }
   0x2 LB: > { %s374_s15 = sadd.s32 4294967295, %s448_s14   ;;  %s489_s16 = sadd.s32 1, %s448_s14   ;;  %s448_s14 = sphi %s476_s14, %s536_s14   ;;  %s444_s13 = sphi %s474_s13, %s535_s13   ;;  %s440_s12 = sphi %s472_s12, %s534_s12  }
   0x3   : > { %s38_s17 = ssub.s32 %s448_s14, %s489_s16  ;;  %s41_s18 = sadd.s32 1, %s444_s13 }
   0x4   : > { %p39_p0 = scmp.eq.s32.totalorder %s38_s17, 0  ;;  %p48_p1 = scmp.ne.s32.totalorder %s444_s13, %s440_s12 }
   0x5   : > { %p49_p2 = scmp.eq.s32.totalorder %s448_s14, 0  ;;  %p377_p4 = scmp.ge.s32.totalorder %s448_s14, 2 }
   0x6   : > { %s498_s19 = scalar_select %p39_p0, %s444_s13, %s41_s18  }
   0x7   : > { %p50_p3 = por %p49_p2, %p48_p1  ;;  %127 = sbr.rel (%p377_p4) target bundleno = 23 (0x17), region = 24 }
   0xe   : > { %130 = sbr.rel (!%p50_p3) target bundleno = 23 (0x17), region = 28  ;;  %s132_s20 = sand.u32 (%p50_p3), 1, %s444_s13  }
   0xf   : > { %s388_s21 = sshll.u32 (%p50_p3), %s448_s14, 4  ;;  %s397_s22 = smul.u32 (%p50_p3), 80, %s132_s20 }
  0x10   : > { %s137_s25 = scalar_lea.vmem (%p50_p3), %s531_s1, %s388_s21 }
  0x11   : > { %v150_v0 = vld [vmem:[%s137_s25] sm:$0xff] (%p50_p3)  ;;  %v152_v1 = vld [vmem:[%s137_s25 + $0x8] sm:$0xff] (%p50_p3)  ;;  %s134_s26 = scalar_lea.vmem (%p50_p3), [#allocation2], %s397_s22 }
  0x12   : > { %v154_v2 = vld [vmem:[%s137_s25 + $0x20] sm:$0xff] (%p50_p3)  ;;  %v156_v3 = vld [vmem:[%s137_s25 + $0x28] sm:$0xff] (%p50_p3)  ;;  %151 = vst [vmem:[%s134_s26] sm:$0xff] (%p50_p3), %v150_v0  ;;  %153 = vst [vmem:[%s134_s26 + $0x8] sm:$0xff] (%p50_p3), %v152_v1 }
  0x13   : > { %v158_v4 = vld [vmem:[%s137_s25 + $0x40] sm:$0xff] (%p50_p3)  ;;  %v160_v5 = vld [vmem:[%s137_s25 + $0x48] sm:$0xff] (%p50_p3)  ;;  %155 = vst [vmem:[%s134_s26 + $0x10] sm:$0xff] (%p50_p3), %v154_v2  ;;  %157 = vst [vmem:[%s134_s26 + $0x18] sm:$0xff] (%p50_p3), %v156_v3 }
  0x14   : > { %159 = vst [vmem:[%s134_s26 + $0x20] sm:$0xff] (%p50_p3), %v158_v4  ;;  %161 = vst [vmem:[%s134_s26 + $0x28] sm:$0xff] (%p50_p3), %v160_v5  ;;  %v162_v6 = vld [vmem:[%s137_s25 + $0x60] sm:$0xff] (%p50_p3)  ;;  %v164_v7 = vld [vmem:[%s137_s25 + $0x68] sm:$0xff] (%p50_p3) }
  0x15   : > { %v166_v8 = vld [vmem:[%s137_s25 + $0x80] sm:$0xff]  ;;  %163 = vst [vmem:[%s134_s26 + $0x30] sm:$0xff] %v162_v6  ;;  %165 = vst [vmem:[%s134_s26 + $0x38] sm:$0xff] %v164_v7  ;;  %v168_v9 = vld [vmem:[%s137_s25 + $0x88] sm:$0xff] }
  0x16   : > { %167 = vst [vmem:[%s134_s26 + $0x40] sm:$0xff] %v166_v8  ;;  %169 = vst [vmem:[%s134_s26 + $0x48] sm:$0xff] %v168_v9 }
  0x17 PF: > { %p380_p5 = scmp.ge.s32.totalorder %s448_s14, 1  ;;  %p174_p6 = scmp.lt.s32.totalorder %s448_s14, 3 }
  0x19   : > { %p175_p7 = pnand %p380_p5, %p174_p6 }
  0x1a   : > { %s181_s27 = sand.u32 (!%p175_p7), 1, %s440_s12   ;;  %v450_v10 = vmov (!%p175_p7), 0.0   ;;  %v451_v11 = vmov (!%p175_p7), 0   ;;  %v222_v12 = vld [vmem:[%s532_s2] sm:$0xff] (!%p175_p7)  ;;  %vm232_vm0 = vcmask (!%p175_p7), 1043456   ;;  %vm228_vm1 = vcmask (!%p175_p7), 293888  }
  0x1b   : > { %178 = sbr.rel (%p175_p7) target bundleno = 260 (0x104), region = 51  ;;  %303 = vmatprep.mubr.f32.mxu0 (!%p175_p7), %v450_v10  ;;  %425 = vset.pattern.permute.xlu0 (!%p175_p7), %v451_v11  ;;  %v211_v27 = vld [vmem:[%s530_s0] sm:$0xff] (!%p175_p7)  ;;  %s381_s7 = sshll.u32 (!%p175_p7), %s374_s15, 1 }
  0x1c   : > { %s398_s28 = smul.u32 (!%p175_p7), 80, %s181_s27  ;;  %225 = vperm.xlu0 (!%p175_p7), %425, %v222_v12   ;;  %p206_p8 = scmp.lt.s32.totalorder (!%p175_p7), %s381_s7, 3 }
  0x1e   : > { %s183_s4 = scalar_lea.vmem (!%p175_p7), [#allocation2], %s398_s28 }
  0x1f   : > { %v213_v13 = vld [vmem:[%s183_s4 + $0x8] sm:$0xff] (!%p175_p7)  ;;  %v215_v14 = vld [vmem:[%s183_s4 + $0x18] sm:$0xff] (!%p175_p7)  ;;  %v212_v15 = vld [vmem:[%s183_s4] sm:$0xff] (!%p175_p7) }
  0x20   : > { %v389_v16 = vpack.c.bf16 (!%p175_p7), %v215_v14, %v213_v13  ;;  %v214_v17 = vld [vmem:[%s183_s4 + $0x10] sm:$0xff] (!%p175_p7)  ;;  %v217_v18 = vld [vmem:[%s183_s4 + $0x28] sm:$0xff] (!%p175_p7)  ;;  %v219_v19 = vld [vmem:[%s183_s4 + $0x38] sm:$0xff] (!%p175_p7) }
  0x21   : > { %v391_v20 = vpack.c.bf16 (!%p175_p7), %v214_v17, %v212_v15  ;;  %v393_v21 = vpack.c.bf16 (!%p175_p7), %v219_v19, %v217_v18  ;;  %v216_v22 = vld [vmem:[%s183_s4 + $0x20] sm:$0xff] (!%p175_p7)  ;;  %v218_v23 = vld [vmem:[%s183_s4 + $0x30] sm:$0xff] (!%p175_p7)  ;;  %v221_v25 = vld [vmem:[%s183_s4 + $0x48] sm:$0xf] (!%p175_p7) }
  0x22   : > { %390 = vmatprep.subr.bf16.mxu0 %v389_v16  ;;  %v395_v24 = vpack.c.bf16 %v218_v23, %v216_v22  ;;  %v220_v26 = vld [vmem:[%s183_s4 + $0x40] sm:$0xf]  ;;  %s538_s7 = smov (!%p206_p8, %s381_s7), 3 }
  0x23   : > { %392 = vmatpush1.bf16.msra.mxu0 %v391_v20  ;;  %s382_s8 = sshll.u32 %s538_s7, 3 }
  0x24   : > { %394 = vmatprep.subr.bf16.mxu0 %v393_v21  ;;  %s209_s11 = scalar_lea.vmem %s533_s3, %s382_s8 }
  0x27   : > { %396 = vmatpush1.bf16.msra.mxu0 %v395_v24 }
  0x28   : > { %383 = vmatprep.subr.msk.mxu0 %vm232_vm0, %v221_v25 }
  0x2b   : > { %384 = vmatpush1.msk.msra.mxu0 %vm232_vm0, %v220_v26 }
  0x2c   : > { %385 = vmatmul.mubr.msk.f32.vlgmr.msra.gmra.mrb[0].mxu0 %vm228_vm1, %v211_v27 }
  0x9b   : > { %v226_v28 = vpop.permute.xlu0 %225 }
  0xff   : > { %v305_v29 = vpop.f32.mrb[0].mxu0 }
 0x100   : > { %v306_v30 = vadd.f32 %v305_v29, %v226_v28  ;;  %v307_v31 = vpop.f32.mrb[1].mxu0 }
 0x101   : > { %v308_v32 = vadd.f32 %v307_v31, %v226_v28 }
 0x102   : > { %310 = vst [vmem:[%s209_s11] sm:$0xff] %v306_v30 }
 0x103   : > { %311 = vst [vmem:[%s209_s11 + $0x8] sm:$0xff] %v308_v32 }
 0x104 PF: > { %p10_p9 = scmp.ge.s32.totalorder %s489_s16, 4   ;;  %s534_s12 = smov %s444_s13 }
 0x105   : > { %s535_s13 = smov %s498_s19  ;;  %s536_s14 = smov %s489_s16 }
 0x106   :  { %12 = sbr.rel (!%p10_p9) target bundleno = 2 (0x2), region = 90 }

</bundles_post_ra>
